<compile_context>
chip_gen: v5e
topology: v5e:2x2
jax: 0.10.0
libtpu: 0.0.40
codegen_flags: <defaults>
</compile_context>

<pallas_src>
import functools

import numpy as np
import jax
import jax.numpy as jnp
from jax.experimental import pallas as pl
from jax.experimental.pallas import tpu as pltpu

# Hard-coded conv weights from the PyTorch module (requires_grad=False constants).
CONV_W = (
    ((1, 0, -1), (1, 0, -1), (1, 0, -1)),
    ((0, 1, 0), (1, -4, 1), (0, 1, 0)),
    ((1, 1, 1), (0, 0, 0), (-1, -1, -1)),
    ((0, -1, 0), (-1, 0, -1), (0, -1, 0)),
)
C_OUT = 4
LANE = 128  # pad FC class dim to a full lane width for unmasked stores / MXU tiles


def build_conv_matrix(h, w):
    """[H*W, C_OUT*H*W] f32 matrix s.t. x_flat @ M == flatten(conv2d(x, pad=1), NCHW)."""
    kw = np.asarray(CONV_W, np.float32)                 # [4, 3, 3]
    m = np.zeros((h * w, C_OUT * h * w), np.float32)
    for c in range(C_OUT):
        for ho in range(h):
            for wo in range(w):
                col = c * h * w + ho * w + wo           # PyTorch NCHW flatten order
                for di in range(3):
                    hi = ho - 1 + di
                    if not 0 <= hi < h:
                        continue
                    for dj in range(3):
                        wi = wo - 1 + dj
                        if 0 <= wi < w:
                            m[hi * w + wi, col] = kw[c, di, dj]
    return m


def prepare_params(conv_bias, fc_weight, fc_bias, input_size):
    """One-time (outside jit) parameter preprocessing into kernel-friendly layouts."""
    h = w = input_size
    k = C_OUT * h * w
    num_classes = fc_weight.shape[0]
    c_pad = ((num_classes + LANE - 1) // LANE) * LANE

    conv_mat = jnp.asarray(build_conv_matrix(h, w))                              # [H*W, K]
    conv_bias_flat = jnp.repeat(jnp.asarray(conv_bias, jnp.float32), h * w)[None, :]  # [1, K]
    fc_w_pad = jnp.zeros((k, c_pad), jnp.float32).at[:, :num_classes].set(
        jnp.asarray(fc_weight, jnp.float32).T)                                   # [K, 128]
    fc_b_pad = jnp.zeros((1, c_pad), jnp.float32).at[0, :num_classes].set(
        jnp.asarray(fc_bias, jnp.float32))                                       # [1, 128]
    return conv_mat, conv_bias_flat, fc_w_pad, fc_b_pad


def fused_cnn_kernel(x_ref, cm_ref, cb_ref, fw_ref, fb_ref, o_ref):
    """Fused conv(1->4,k=3,p=1)+bias+ReLU+flatten+FC, all on the MXU.

    x_ref:  VMEM [N, H*W]          flattened input image (C_in == 1)
    cm_ref: VMEM [H*W, 4*H*W]      constant unrolled-conv matrix (NCHW column order)
    cb_ref: VMEM [1, 4*H*W]        conv bias broadcast per output position
    fw_ref: VMEM [4*H*W, 128]      FC weight, pre-transposed, classes zero-padded
    fb_ref: VMEM [1, 128]          FC bias, classes zero-padded
    o_ref:  VMEM [N, 128]          padded logits (lane-dense store)
    """
    hmid = jnp.dot(x_ref[...], cm_ref[...], preferred_element_type=jnp.float32)
    hmid = jnp.maximum(hmid + cb_ref[...], 0.0)                     # [N, 4*H*W]
    o_ref[...] = (
        jnp.dot(hmid, fw_ref[...], preferred_element_type=jnp.float32) + fb_ref[...]
    )


def fused_forward_pallas(x_flat, conv_mat, conv_bias_flat, fc_w_pad, fc_b_pad):
    n, k_in = x_flat.shape
    k_mid = conv_mat.shape[1]
    c_pad = fc_w_pad.shape[1]
    return pl.pallas_call(
        fused_cnn_kernel,
        out_shape=jax.ShapeDtypeStruct((n, c_pad), jnp.float32),
        grid=(1,),
        in_specs=[
            pl.BlockSpec((n, k_in), lambda i: (0, 0)),
            pl.BlockSpec((k_in, k_mid), lambda i: (0, 0)),
            pl.BlockSpec((1, k_mid), lambda i: (0, 0)),
            pl.BlockSpec((k_mid, c_pad), lambda i: (0, 0)),
            pl.BlockSpec((1, c_pad), lambda i: (0, 0)),
        ],
        out_specs=pl.BlockSpec((n, c_pad), lambda i: (0, 0)),
        compiler_params=pltpu.CompilerParams(dimension_semantics=("arbitrary",)),
    )(x_flat, conv_mat, conv_bias_flat, fc_w_pad, fc_b_pad)


@functools.partial(jax.jit, static_argnames=("num_classes",))
def manual_cnn_forward(x, conv_mat, conv_bias_flat, fc_w_pad, fc_b_pad, *, num_classes):
    """x: [N, 1, H, W] (NCHW, C_in=1). Returns logits [N, num_classes]."""
    n = x.shape[0]
    x_flat = x.reshape(n, -1)     # contiguous NCHW flatten (C_in==1) -> layout-only
    out_pad = fused_forward_pallas(x_flat, conv_mat, conv_bias_flat, fc_w_pad, fc_b_pad)
    return out_pad[:, :num_classes]


def reference(x, conv_bias, fc_weight, fc_bias):
    conv_w = jnp.asarray(CONV_W, jnp.float32)[:, None, :, :]   # OIHW
    y = jax.lax.conv_general_dilated(
        x, conv_w, window_strides=(1, 1), padding=((1, 1), (1, 1)),
        dimension_numbers=("NCHW", "OIHW", "NCHW"),
    )
    y = jnp.maximum(y + conv_bias[None, :, None, None], 0.0)
    y = y.reshape(y.shape[0], -1)
    return y @ fc_weight.T + fc_bias


if __name__ == "__main__":
    N, INPUT_SIZE, NUM_CLASSES = 2, 16, 10
    K = INPUT_SIZE * INPUT_SIZE * C_OUT

    key = jax.random.PRNGKey(0)
    kx, kb, kw, kfb = jax.random.split(key, 4)

    x = jax.random.normal(kx, (N, 1, INPUT_SIZE, INPUT_SIZE), jnp.float32)
    # Deterministic "PyTorch-default-style" init for the trainable-shaped params.
    conv_bound = 1.0 / (1 * 3 * 3) ** 0.5
    conv_bias = jax.random.uniform(kb, (C_OUT,), jnp.float32, -conv_bound, conv_bound)
    fc_bound = 1.0 / K ** 0.5
    fc_weight = jax.random.uniform(kw, (NUM_CLASSES, K), jnp.float32, -fc_bound, fc_bound)
    fc_bias = jax.random.uniform(kfb, (NUM_CLASSES,), jnp.float32, -fc_bound, fc_bound)

    # One-time parameter preprocessing (outside jit, like module construction).
    conv_mat, conv_bias_flat, fc_w_pad, fc_b_pad = prepare_params(
        conv_bias, fc_weight, fc_bias, INPUT_SIZE)

    out = manual_cnn_forward(x, conv_mat, conv_bias_flat, fc_w_pad, fc_b_pad,
                             num_classes=NUM_CLASSES)
    out = jax.block_until_ready(out)

    ref = reference(x, conv_bias, fc_weight, fc_bias)
    assert out.shape == (N, NUM_CLASSES)
    assert jnp.allclose(out, ref, rtol=1e-5, atol=1e-5), "mismatch vs JAX reference"

    print("KERNEL_OK")
</pallas_src>

<mosaic_0001>
module attributes {stable_mosaic.version = 11 : i64} {
  func.func @fused_cnn_kernel(%arg0: i32, %arg1: memref<2x256xf32, #tpu.memory_space<vmem>>, %arg2: memref<256x1024xf32, #tpu.memory_space<vmem>>, %arg3: memref<1x1024xf32, #tpu.memory_space<vmem>>, %arg4: memref<1024x128xf32, #tpu.memory_space<vmem>>, %arg5: memref<1x128xf32, #tpu.memory_space<vmem>>, %arg6: memref<2x128xf32, #tpu.memory_space<vmem>>) attributes {dimension_semantics = [#tpu.dimension_semantics<arbitrary>], iteration_bounds = array<i64: 1>, scalar_prefetch = 0 : i64, scratch_operands = 0 : i64, tpu.core_type = #tpu.core_type<tc>, window_params = [{pipeline_mode = #tpu.pipeline_mode<synchronous>, transform_indices = @transform_0, window_bounds = array<i64: 2, 256>}, {pipeline_mode = #tpu.pipeline_mode<synchronous>, transform_indices = @transform_1, window_bounds = array<i64: 256, 1024>}, {pipeline_mode = #tpu.pipeline_mode<synchronous>, transform_indices = @transform_2, window_bounds = array<i64: 1, 1024>}, {pipeline_mode = #tpu.pipeline_mode<synchronous>, transform_indices = @transform_3, window_bounds = array<i64: 1024, 128>}, {pipeline_mode = #tpu.pipeline_mode<synchronous>, transform_indices = @transform_4, window_bounds = array<i64: 1, 128>}, {pipeline_mode = #tpu.pipeline_mode<synchronous>, transform_indices = @transform_5, window_bounds = array<i64: 2, 128>}]} {
    %c0 = arith.constant 0 : index
    %c0_0 = arith.constant 0 : index
    %0 = vector.load %arg1[%c0, %c0_0] : memref<2x256xf32, #tpu.memory_space<vmem>>, vector<2x256xf32>
    %c0_1 = arith.constant 0 : index
    %c0_2 = arith.constant 0 : index
    %1 = vector.load %arg2[%c0_1, %c0_2] : memref<256x1024xf32, #tpu.memory_space<vmem>>, vector<256x1024xf32>
    %cst = arith.constant dense<0.000000e+00> : vector<2x1024xf32>
    %2 = tpu.matmul %0, %1, %cst {dimension_numbers = #tpu.dot_dimension_numbers<[1], [0], [0], [1], [0, 0, 1, 1], [], []>} : vector<2x256xf32>, vector<256x1024xf32>, vector<2x1024xf32> -> vector<2x1024xf32>
    %c0_3 = arith.constant 0 : index
    %c0_4 = arith.constant 0 : index
    %3 = vector.load %arg3[%c0_3, %c0_4] : memref<1x1024xf32, #tpu.memory_space<vmem>>, vector<1x1024xf32>
    %4 = vector.broadcast %3 : vector<1x1024xf32> to vector<2x1024xf32>
    %5 = arith.addf %2, %4 : vector<2x1024xf32>
    %cst_5 = arith.constant 0.000000e+00 : f32
    %6 = vector.broadcast %cst_5 : f32 to vector<2x1024xf32>
    %7 = arith.maximumf %5, %6 : vector<2x1024xf32>
    %c0_6 = arith.constant 0 : index
    %c0_7 = arith.constant 0 : index
    %8 = vector.load %arg4[%c0_6, %c0_7] : memref<1024x128xf32, #tpu.memory_space<vmem>>, vector<1024x128xf32>
    %cst_8 = arith.constant dense<0.000000e+00> : vector<2x128xf32>
    %9 = tpu.matmul %7, %8, %cst_8 {dimension_numbers = #tpu.dot_dimension_numbers<[1], [0], [0], [1], [0, 0, 1, 1], [], []>} : vector<2x1024xf32>, vector<1024x128xf32>, vector<2x128xf32> -> vector<2x128xf32>
    %c0_9 = arith.constant 0 : index
    %c0_10 = arith.constant 0 : index
    %10 = vector.load %arg5[%c0_9, %c0_10] : memref<1x128xf32, #tpu.memory_space<vmem>>, vector<1x128xf32>
    %11 = vector.broadcast %10 : vector<1x128xf32> to vector<2x128xf32>
    %12 = arith.addf %9, %11 : vector<2x128xf32>
    %c0_11 = arith.constant 0 : index
    %c0_12 = arith.constant 0 : index
    %13 = vector.load %arg6[%c0_11, %c0_12] : memref<2x128xf32, #tpu.memory_space<vmem>>, vector<2x128xf32>
    tpu.vector_store %arg6[%c0_11, %c0_12], %12 {strides = array<i32>} : memref<2x128xf32, #tpu.memory_space<vmem>>, vector<2x128xf32>,
    return
  }
  func.func @transform_0(%arg0: i32) -> (i32, i32) {
    %c0_i32 = arith.constant 0 : i32
    %c0_i32_0 = arith.constant 0 : i32
    %c0_i32_1 = arith.constant 0 : i32
    return %c0_i32, %c0_i32_0 : i32, i32
  }
  func.func @transform_1(%arg0: i32) -> (i32, i32) {
    %c0_i32 = arith.constant 0 : i32
    %c0_i32_0 = arith.constant 0 : i32
    %c0_i32_1 = arith.constant 0 : i32
    return %c0_i32, %c0_i32_0 : i32, i32
  }
  func.func @transform_2(%arg0: i32) -> (i32, i32) {
    %c0_i32 = arith.constant 0 : i32
    %c0_i32_0 = arith.constant 0 : i32
    %c0_i32_1 = arith.constant 0 : i32
    return %c0_i32, %c0_i32_0 : i32, i32
  }
  func.func @transform_3(%arg0: i32) -> (i32, i32) {
    %c0_i32 = arith.constant 0 : i32
    %c0_i32_0 = arith.constant 0 : i32
    %c0_i32_1 = arith.constant 0 : i32
    return %c0_i32, %c0_i32_0 : i32, i32
  }
  func.func @transform_4(%arg0: i32) -> (i32, i32) {
    %c0_i32 = arith.constant 0 : i32
    %c0_i32_0 = arith.constant 0 : i32
    %c0_i32_1 = arith.constant 0 : i32
    return %c0_i32, %c0_i32_0 : i32, i32
  }
  func.func @transform_5(%arg0: i32) -> (i32, i32) {
    %c0_i32 = arith.constant 0 : i32
    %c0_i32_0 = arith.constant 0 : i32
    %c0_i32_1 = arith.constant 0 : i32
    return %c0_i32, %c0_i32_0 : i32, i32
  }
}

</mosaic_0001>

<bundles_post_ra>
// kernel: manual_cnn_forward.1
= control target key start
LH: loop header
LB: loop body
LE: loop exit
PB: predicated region body
PF: predicated region fallthrough
CT: control target
= control target key end

     0   :  { %10 = vsyncpa [#allocation3], 0  ;;  %s1144_s0 = inlined_call_operand.vmem [shape: f32[2,256], index: 0, kind: input, shape index: {}]   ;;  %s1145_s1 = inlined_call_operand.hbm [shape: f32[256,1024], index: 1, kind: input, shape index: {}]   ;;  %s1146_s2 = inlined_call_operand.vmem [shape: f32[1,1024], index: 2, kind: input, shape index: {}]   ;;  %s1147_s3 = inlined_call_operand.hbm [shape: f32[1024,128], index: 3, kind: input, shape index: {}]   ;;  %s1148_s4 = inlined_call_operand.vmem [shape: f32[1,128], index: 4, kind: input, shape index: {}]   ;;  %s1149_s5 = inlined_call_operand.hbm [shape: f32[2,128], index: 5, kind: output, shape index: {}]  }
   0x1   :  { %11 = vsyncpa [#allocation6], 0 }
   0x2   :  { %12 = vsyncpa [#allocation4], 0  ;;  %s19_s20 = sshll.u32 %s1145_s1, 4  ;;  %s1059_s21 = smov [#allocation2]   ;;  %s20_s20 = int_to_ptr.hbm [resolvable:$true] %s19_s20 }
   0x3   :  { %s21_s22 = sshll.u32 %s1059_s21, 4  ;;  %s34_s25 = sshll.u32 %s1147_s3, 4  ;;  %s22_s22 = int_to_ptr.vmem [resolvable:$true] %s21_s22  ;;  %s35_s25 = int_to_ptr.hbm [resolvable:$true] %s34_s25 }
   0x4   :  { %s1060_s26 = smov 1024   ;;  %s1061_s27 = smov 64  }
   0x5   :  { %27 = dma.hbm_to_vmem [thread:$0]  %s20_s20, 32768, %s22_s22, [#allocation3], %s1060_s26, %s1060_s26, %s1061_s27  }
   0x6   :  { %s1062_s28 = smov [#allocation5]   ;;  %s1063_s30 = smov 128  }
   0x7   :  { %s36_s29 = sshll.u32 %s1062_s28, 4  ;;  %s1064_s6 = smov 8   ;;  %s37_s29 = int_to_ptr.vmem [resolvable:$true] %s36_s29 }
   0x8   :  { %42 = dma.hbm_to_vmem [thread:$0]  %s35_s25, 16384, %s37_s29, [#allocation6], %s1063_s30, %s1063_s30, %s1064_s6  }
   0x9   :  { %1053 = dma.done.wait [#allocation3], 32768  }
   0xa   :  { %1054 = vsyncadd [#allocation3], 4294934528 }
   0xb   :  { %1055 = dma.done.wait [#allocation6], 16384  }
   0xc   :  { %1056 = vsyncadd [#allocation6], 4294950912  ;;  %v174_v0 = vld [vmem:[#allocation2 + $0x3c0] sm:$0xff]  ;;  %v175_v1 = vld [vmem:[#allocation2 + $0x3c8] sm:$0xff]  ;;  %s1065_s9 = smov [#allocation7]   ;;  %s962_s13 = sshll.u32 %s1149_s5, 4  ;;  %s963_s13 = int_to_ptr.hbm [resolvable:$true] %s962_s13 }
   0xd   :  { %v166_v2 = vld [vmem:[#allocation2 + $0x380] sm:$0xff]  ;;  %334 = vmatpush.msra.mxu0 %v174_v0  ;;  %374 = vmatpush.msra.mxu2 %v175_v1  ;;  %v167_v4 = vld [vmem:[#allocation2 + $0x388] sm:$0xff]  ;;  %v176_v62 = vld [vmem:[#allocation2 + $0x3d0] sm:$0xff]  ;;  %s960_s10 = sshll.u32 %s1065_s9, 4  ;;  %s961_s10 = int_to_ptr.vmem [resolvable:$true] %s960_s10 }
   0xe   :  { %v302_v3 = vld [vmem:[#allocation2 + $0x7c0] sm:$0xff]  ;;  %v303_v5 = vld [vmem:[#allocation2 + $0x7c8] sm:$0xff]  ;;  %v177_v63 = vld [vmem:[#allocation2 + $0x3d8] sm:$0xff] }
   0xf   :  { %354 = vmatpush.msra.mxu1 %v302_v3  ;;  %394 = vmatpush.msra.mxu3 %v303_v5  ;;  %v158_v6 = vld [vmem:[#allocation2 + $0x340] sm:$0xff]  ;;  %v159_v8 = vld [vmem:[#allocation2 + $0x348] sm:$0xff]  ;;  %v304_v3 = vld [vmem:[#allocation2 + $0x7d0] sm:$0xff] }
  0x10   :  { %v294_v7 = vld [vmem:[#allocation2 + $0x780] sm:$0xff]  ;;  %335 = vmatpush.msra.mxu0 %v166_v2  ;;  %375 = vmatpush.msra.mxu2 %v167_v4  ;;  %v295_v9 = vld [vmem:[#allocation2 + $0x788] sm:$0xff]  ;;  %v168_v2 = vld [vmem:[#allocation2 + $0x390] sm:$0xff] }
  0x11   :  { %v286_v10 = vld [vmem:[#allocation2 + $0x740] sm:$0xff]  ;;  %355 = vmatpush.msra.mxu1 %v294_v7  ;;  %395 = vmatpush.msra.mxu3 %v295_v9  ;;  %v151_v12 = vld [vmem:[#allocation2 + $0x308] sm:$0xff]  ;;  %v169_v4 = vld [vmem:[#allocation2 + $0x398] sm:$0xff] }
  0x12   :  { %v150_v11 = vld [vmem:[#allocation2 + $0x300] sm:$0xff]  ;;  %v287_v13 = vld [vmem:[#allocation2 + $0x748] sm:$0xff]  ;;  %336 = vmatpush.msra.mxu0 %v158_v6  ;;  %376 = vmatpush.msra.mxu2 %v159_v8  ;;  %v305_v5 = vld [vmem:[#allocation2 + $0x7d8] sm:$0xff] }
  0x13   :  { %v278_v14 = vld [vmem:[#allocation2 + $0x700] sm:$0xff]  ;;  %v279_v15 = vld [vmem:[#allocation2 + $0x708] sm:$0xff]  ;;  %356 = vmatpush.msra.mxu1 %v286_v10  ;;  %396 = vmatpush.msra.mxu3 %v287_v13  ;;  %v160_v6 = vld [vmem:[#allocation2 + $0x350] sm:$0xff] }
  0x14   :  { %v142_v16 = vld [vmem:[#allocation2 + $0x2c0] sm:$0xff]  ;;  %v143_v17 = vld [vmem:[#allocation2 + $0x2c8] sm:$0xff]  ;;  %337 = vmatpush.msra.mxu0 %v150_v11  ;;  %377 = vmatpush.msra.mxu2 %v151_v12  ;;  %v296_v7 = vld [vmem:[#allocation2 + $0x790] sm:$0xff] }
  0x15   :  { %v270_v18 = vld [vmem:[#allocation2 + $0x6c0] sm:$0xff]  ;;  %v271_v19 = vld [vmem:[#allocation2 + $0x6c8] sm:$0xff]  ;;  %357 = vmatpush.msra.mxu1 %v278_v14  ;;  %397 = vmatpush.msra.mxu3 %v279_v15  ;;  %v161_v8 = vld [vmem:[#allocation2 + $0x358] sm:$0xff] }
  0x16   :  { %v134_v20 = vld [vmem:[#allocation2 + $0x280] sm:$0xff]  ;;  %v135_v21 = vld [vmem:[#allocation2 + $0x288] sm:$0xff]  ;;  %338 = vmatpush.msra.mxu0 %v142_v16  ;;  %378 = vmatpush.msra.mxu2 %v143_v17  ;;  %v297_v9 = vld [vmem:[#allocation2 + $0x798] sm:$0xff] }
  0x17   :  { %v262_v22 = vld [vmem:[#allocation2 + $0x680] sm:$0xff]  ;;  %v263_v23 = vld [vmem:[#allocation2 + $0x688] sm:$0xff]  ;;  %358 = vmatpush.msra.mxu1 %v270_v18  ;;  %398 = vmatpush.msra.mxu3 %v271_v19  ;;  %v152_v10 = vld [vmem:[#allocation2 + $0x310] sm:$0xff] }
  0x18   :  { %v126_v24 = vld [vmem:[#allocation2 + $0x240] sm:$0xff]  ;;  %v127_v25 = vld [vmem:[#allocation2 + $0x248] sm:$0xff]  ;;  %339 = vmatpush.msra.mxu0 %v134_v20  ;;  %379 = vmatpush.msra.mxu2 %v135_v21  ;;  %v288_v11 = vld [vmem:[#allocation2 + $0x750] sm:$0xff] }
  0x19   :  { %v254_v26 = vld [vmem:[#allocation2 + $0x640] sm:$0xff]  ;;  %v255_v27 = vld [vmem:[#allocation2 + $0x648] sm:$0xff]  ;;  %359 = vmatpush.msra.mxu1 %v262_v22  ;;  %399 = vmatpush.msra.mxu3 %v263_v23  ;;  %v153_v12 = vld [vmem:[#allocation2 + $0x318] sm:$0xff] }
  0x1a   :  { %v118_v28 = vld [vmem:[#allocation2 + $0x200] sm:$0xff]  ;;  %v119_v29 = vld [vmem:[#allocation2 + $0x208] sm:$0xff]  ;;  %340 = vmatpush.msra.mxu0 %v126_v24  ;;  %380 = vmatpush.msra.mxu2 %v127_v25  ;;  %v289_v13 = vld [vmem:[#allocation2 + $0x758] sm:$0xff] }
  0x1b   :  { %v246_v30 = vld [vmem:[#allocation2 + $0x600] sm:$0xff]  ;;  %v247_v31 = vld [vmem:[#allocation2 + $0x608] sm:$0xff]  ;;  %360 = vmatpush.msra.mxu1 %v254_v26  ;;  %400 = vmatpush.msra.mxu3 %v255_v27  ;;  %v53_v14 = vld [vmem:[%s1144_s0] sm:$0xf] }
  0x1c   :  { %v110_v32 = vld [vmem:[#allocation2 + $0x1c0] sm:$0xff]  ;;  %v111_v33 = vld [vmem:[#allocation2 + $0x1c8] sm:$0xff]  ;;  %341 = vmatpush.msra.mxu0 %v118_v28  ;;  %381 = vmatpush.msra.mxu2 %v119_v29  ;;  %v144_v15 = vld [vmem:[#allocation2 + $0x2d0] sm:$0xff]  ;;  %329 = vst [vmem:[#allocation1] ss:$4 sm:$0xff] %v53_v14 }
  0x1d   :  { %v238_v34 = vld [vmem:[#allocation2 + $0x5c0] sm:$0xff]  ;;  %v239_v35 = vld [vmem:[#allocation2 + $0x5c8] sm:$0xff]  ;;  %361 = vmatpush.msra.mxu1 %v246_v30  ;;  %401 = vmatpush.msra.mxu3 %v247_v31  ;;  %v280_v16 = vld [vmem:[#allocation2 + $0x710] sm:$0xff] }
  0x1e   :  { %v102_v36 = vld [vmem:[#allocation2 + $0x180] sm:$0xff]  ;;  %v103_v37 = vld [vmem:[#allocation2 + $0x188] sm:$0xff]  ;;  %342 = vmatpush.msra.mxu0 %v110_v32  ;;  %382 = vmatpush.msra.mxu2 %v111_v33  ;;  %v145_v17 = vld [vmem:[#allocation2 + $0x2d8] sm:$0xff] }
  0x1f   :  { %v230_v38 = vld [vmem:[#allocation2 + $0x580] sm:$0xff]  ;;  %v231_v39 = vld [vmem:[#allocation2 + $0x588] sm:$0xff]  ;;  %362 = vmatpush.msra.mxu1 %v238_v34  ;;  %402 = vmatpush.msra.mxu3 %v239_v35  ;;  %v281_v18 = vld [vmem:[#allocation2 + $0x718] sm:$0xff] }
  0x20   :  { %v94_v40 = vld [vmem:[#allocation2 + $0x140] sm:$0xff]  ;;  %v95_v41 = vld [vmem:[#allocation2 + $0x148] sm:$0xff]  ;;  %343 = vmatpush.msra.mxu0 %v102_v36  ;;  %383 = vmatpush.msra.mxu2 %v103_v37  ;;  %v136_v19 = vld [vmem:[#allocation2 + $0x290] sm:$0xff] }
  0x21   :  { %v222_v42 = vld [vmem:[#allocation2 + $0x540] sm:$0xff]  ;;  %v223_v43 = vld [vmem:[#allocation2 + $0x548] sm:$0xff]  ;;  %363 = vmatpush.msra.mxu1 %v230_v38  ;;  %403 = vmatpush.msra.mxu3 %v231_v39  ;;  %v272_v20 = vld [vmem:[#allocation2 + $0x6d0] sm:$0xff] }
  0x22   :  { %v86_v44 = vld [vmem:[#allocation2 + $0x100] sm:$0xff]  ;;  %v87_v45 = vld [vmem:[#allocation2 + $0x108] sm:$0xff]  ;;  %344 = vmatpush.msra.mxu0 %v94_v40  ;;  %384 = vmatpush.msra.mxu2 %v95_v41  ;;  %v137_v21 = vld [vmem:[#allocation2 + $0x298] sm:$0xff] }
  0x23   :  { %v214_v46 = vld [vmem:[#allocation2 + $0x500] sm:$0xff]  ;;  %v215_v47 = vld [vmem:[#allocation2 + $0x508] sm:$0xff]  ;;  %364 = vmatpush.msra.mxu1 %v222_v42  ;;  %404 = vmatpush.msra.mxu3 %v223_v43  ;;  %v273_v22 = vld [vmem:[#allocation2 + $0x6d8] sm:$0xff] }
  0x24   :  { %v78_v48 = vld [vmem:[#allocation2 + $0xc0] sm:$0xff]  ;;  %v79_v49 = vld [vmem:[#allocation2 + $0xc8] sm:$0xff]  ;;  %345 = vmatpush.msra.mxu0 %v86_v44  ;;  %385 = vmatpush.msra.mxu2 %v87_v45  ;;  %v128_v23 = vld [vmem:[#allocation2 + $0x250] sm:$0xff] }
  0x25   :  { %v206_v50 = vld [vmem:[#allocation2 + $0x4c0] sm:$0xff]  ;;  %v207_v51 = vld [vmem:[#allocation2 + $0x4c8] sm:$0xff]  ;;  %365 = vmatpush.msra.mxu1 %v214_v46  ;;  %405 = vmatpush.msra.mxu3 %v215_v47  ;;  %v264_v24 = vld [vmem:[#allocation2 + $0x690] sm:$0xff] }
  0x26   :  { %v70_v52 = vld [vmem:[#allocation2 + $0x80] sm:$0xff]  ;;  %v71_v53 = vld [vmem:[#allocation2 + $0x88] sm:$0xff]  ;;  %346 = vmatpush.msra.mxu0 %v78_v48  ;;  %386 = vmatpush.msra.mxu2 %v79_v49  ;;  %v129_v25 = vld [vmem:[#allocation2 + $0x258] sm:$0xff] }
  0x27   :  { %v198_v54 = vld [vmem:[#allocation2 + $0x480] sm:$0xff]  ;;  %v199_v55 = vld [vmem:[#allocation2 + $0x488] sm:$0xff]  ;;  %366 = vmatpush.msra.mxu1 %v206_v50  ;;  %406 = vmatpush.msra.mxu3 %v207_v51  ;;  %v265_v26 = vld [vmem:[#allocation2 + $0x698] sm:$0xff] }
  0x28   :  { %v62_v56 = vld [vmem:[#allocation2 + $0x40] sm:$0xff]  ;;  %v63_v57 = vld [vmem:[#allocation2 + $0x48] sm:$0xff]  ;;  %347 = vmatpush.msra.mxu0 %v70_v52  ;;  %387 = vmatpush.msra.mxu2 %v71_v53  ;;  %v120_v27 = vld [vmem:[#allocation2 + $0x210] sm:$0xff] }
  0x29   :  { %v190_v58 = vld [vmem:[#allocation2 + $0x440] sm:$0xff]  ;;  %v191_v59 = vld [vmem:[#allocation2 + $0x448] sm:$0xff]  ;;  %367 = vmatpush.msra.mxu1 %v198_v54  ;;  %407 = vmatpush.msra.mxu3 %v199_v55  ;;  %v256_v28 = vld [vmem:[#allocation2 + $0x650] sm:$0xff] }
  0x2a   :  { %v54_v60 = vld [vmem:[#allocation2] sm:$0xff]  ;;  %v55_v61 = vld [vmem:[#allocation2 + $0x8] sm:$0xff]  ;;  %348 = vmatpush.msra.mxu0 %v62_v56  ;;  %388 = vmatpush.msra.mxu2 %v63_v57  ;;  %v121_v29 = vld [vmem:[#allocation2 + $0x218] sm:$0xff] }
  0x2b   :  { %368 = vmatpush.msra.mxu1 %v190_v58  ;;  %408 = vmatpush.msra.mxu3 %v191_v59  ;;  %v182_v0 = vld [vmem:[#allocation2 + $0x400] sm:$0xff]  ;;  %v183_v1 = vld [vmem:[#allocation2 + $0x408] sm:$0xff]  ;;  %v257_v30 = vld [vmem:[#allocation2 + $0x658] sm:$0xff] }
  0x2c   :  { %349 = vmatpush.msra.mxu0 %v54_v60  ;;  %389 = vmatpush.msra.mxu2 %v55_v61  ;;  %v112_v31 = vld [vmem:[#allocation2 + $0x1d0] sm:$0xff]  ;;  %v113_v33 = vld [vmem:[#allocation2 + $0x1d8] sm:$0xff]  ;;  %v1108_v52 = vld.sshfl [vmem:[#allocation1 + $0x8] sm:$0xff pattern:$0x73625140] }
  0x2d   :  { %369 = vmatpush.msra.mxu1 %v182_v0  ;;  %409 = vmatpush.msra.mxu3 %v183_v1  ;;  %v248_v32 = vld [vmem:[#allocation2 + $0x610] sm:$0xff]  ;;  %v249_v34 = vld [vmem:[#allocation2 + $0x618] sm:$0xff]  ;;  %v178_v1 = vld [vmem:[#allocation2 + $0x3e0] sm:$0xff] }
  0x2e   :  { %414 = vmatpush.msrb.mxu0 %v176_v62  ;;  %454 = vmatpush.msrb.mxu2 %v177_v63  ;;  %v104_v35 = vld [vmem:[#allocation2 + $0x190] sm:$0xff]  ;;  %v105_v37 = vld [vmem:[#allocation2 + $0x198] sm:$0xff]  ;;  %v290_v14 = vld [vmem:[#allocation2 + $0x760] sm:$0xff] }
  0x2f   :  { %434 = vmatpush.msrb.mxu1 %v304_v3  ;;  %474 = vmatpush.msrb.mxu3 %v305_v5  ;;  %v240_v36 = vld [vmem:[#allocation2 + $0x5d0] sm:$0xff]  ;;  %v241_v38 = vld [vmem:[#allocation2 + $0x5d8] sm:$0xff]  ;;  %v170_v5 = vld [vmem:[#allocation2 + $0x3a0] sm:$0xff] }
  0x30   :  { %415 = vmatpush.msrb.mxu0 %v168_v2  ;;  %455 = vmatpush.msrb.mxu2 %v169_v4  ;;  %v96_v39 = vld [vmem:[#allocation2 + $0x150] sm:$0xff]  ;;  %v97_v41 = vld [vmem:[#allocation2 + $0x158] sm:$0xff]  ;;  %v179_v2 = vld [vmem:[#allocation2 + $0x3e8] sm:$0xff] }
  0x31   :  { %435 = vmatpush.msrb.mxu1 %v296_v7  ;;  %475 = vmatpush.msrb.mxu3 %v297_v9  ;;  %v232_v40 = vld [vmem:[#allocation2 + $0x590] sm:$0xff]  ;;  %v233_v42 = vld [vmem:[#allocation2 + $0x598] sm:$0xff]  ;;  %v171_v7 = vld [vmem:[#allocation2 + $0x3a8] sm:$0xff] }
  0x32   :  { %416 = vmatpush.msrb.mxu0 %v160_v6  ;;  %456 = vmatpush.msrb.mxu2 %v161_v8  ;;  %v88_v43 = vld [vmem:[#allocation2 + $0x110] sm:$0xff]  ;;  %v89_v45 = vld [vmem:[#allocation2 + $0x118] sm:$0xff]  ;;  %v306_v6 = vld [vmem:[#allocation2 + $0x7e0] sm:$0xff] }
  0x33   :  { %436 = vmatpush.msrb.mxu1 %v288_v11  ;;  %476 = vmatpush.msrb.mxu3 %v289_v13  ;;  %v224_v44 = vld [vmem:[#allocation2 + $0x550] sm:$0xff]  ;;  %v225_v46 = vld [vmem:[#allocation2 + $0x558] sm:$0xff]  ;;  %v307_v8 = vld [vmem:[#allocation2 + $0x7e8] sm:$0xff] }
  0x34   :  { %417 = vmatpush.msrb.mxu0 %v152_v10  ;;  %457 = vmatpush.msrb.mxu2 %v153_v12  ;;  %v1105_v47 = vld.sshfl [vmem:[#allocation1] sm:$0xff pattern:$0x73625140]  ;;  %v80_v48 = vld [vmem:[#allocation2 + $0xd0] sm:$0xff]  ;;  %v162_v9 = vld [vmem:[#allocation2 + $0x360] sm:$0xff] }
  0x35   :  { %437 = vmatpush.msrb.mxu1 %v280_v16  ;;  %477 = vmatpush.msrb.mxu3 %v281_v18  ;;  %v216_v49 = vld [vmem:[#allocation2 + $0x510] sm:$0xff]  ;;  %v81_v50 = vld [vmem:[#allocation2 + $0xd8] sm:$0xff]  ;;  %v298_v10 = vld [vmem:[#allocation2 + $0x7a0] sm:$0xff] }
  0x36   :  { %418 = vmatpush.msrb.mxu0 %v144_v15  ;;  %458 = vmatpush.msrb.mxu2 %v145_v17  ;;  %v217_v51 = vld [vmem:[#allocation2 + $0x518] sm:$0xff]  ;;  %v72_v53 = vld [vmem:[#allocation2 + $0x90] sm:$0xff]  ;;  %v163_v11 = vld [vmem:[#allocation2 + $0x368] sm:$0xff] }
  0x37   :  { %438 = vmatpush.msrb.mxu1 %v272_v20  ;;  %478 = vmatpush.msrb.mxu3 %v273_v22  ;;  %v208_v54 = vld [vmem:[#allocation2 + $0x4d0] sm:$0xff]  ;;  %v73_v55 = vld [vmem:[#allocation2 + $0x98] sm:$0xff]  ;;  %v299_v12 = vld [vmem:[#allocation2 + $0x7a8] sm:$0xff] }
  0x38   :  { %419 = vmatpush.msrb.mxu0 %v136_v19  ;;  %459 = vmatpush.msrb.mxu2 %v137_v21  ;;  %v209_v56 = vld [vmem:[#allocation2 + $0x4d8] sm:$0xff]  ;;  %v64_v57 = vld [vmem:[#allocation2 + $0x50] sm:$0xff]  ;;  %v154_v13 = vld [vmem:[#allocation2 + $0x320] sm:$0xff] }
  0x39   :  { %439 = vmatpush.msrb.mxu1 %v264_v24  ;;  %479 = vmatpush.msrb.mxu3 %v265_v26  ;;  %v200_v58 = vld [vmem:[#allocation2 + $0x490] sm:$0xff]  ;;  %v65_v59 = vld [vmem:[#allocation2 + $0x58] sm:$0xff]  ;;  %v155_v15 = vld [vmem:[#allocation2 + $0x328] sm:$0xff] }
  0x3a   :  { %420 = vmatpush.msrb.mxu0 %v128_v23  ;;  %460 = vmatpush.msrb.mxu2 %v129_v25  ;;  %v201_v60 = vld [vmem:[#allocation2 + $0x498] sm:$0xff]  ;;  %v56_v61 = vld [vmem:[#allocation2 + $0x10] sm:$0xff]  ;;  %v291_v16 = vld [vmem:[#allocation2 + $0x768] sm:$0xff] }
  0x3b   :  { %440 = vmatpush.msrb.mxu1 %v256_v28  ;;  %480 = vmatpush.msrb.mxu3 %v257_v30  ;;  %v192_v62 = vld [vmem:[#allocation2 + $0x450] sm:$0xff]  ;;  %v57_v63 = vld [vmem:[#allocation2 + $0x18] sm:$0xff]  ;;  %v146_v17 = vld [vmem:[#allocation2 + $0x2e0] sm:$0xff] }
  0x3c   :  { %421 = vmatpush.msrb.mxu0 %v120_v27  ;;  %461 = vmatpush.msrb.mxu2 %v121_v29  ;;  %v193_v0 = vld [vmem:[#allocation2 + $0x458] sm:$0xff]  ;;  %v184_v3 = vld [vmem:[#allocation2 + $0x410] sm:$0xff]  ;;  %v282_v18 = vld [vmem:[#allocation2 + $0x720] sm:$0xff] }
  0x3d   :  { %441 = vmatpush.msrb.mxu1 %v248_v32  ;;  %481 = vmatpush.msrb.mxu3 %v249_v34  ;;  %v185_v4 = vld [vmem:[#allocation2 + $0x418] sm:$0xff]  ;;  %v147_v19 = vld [vmem:[#allocation2 + $0x2e8] sm:$0xff]  ;;  %v138_v21 = vld [vmem:[#allocation2 + $0x2a0] sm:$0xff] }
  0x3e   :  { %422 = vmatpush.msrb.mxu0 %v112_v31  ;;  %462 = vmatpush.msrb.mxu2 %v113_v33  ;;  %v283_v20 = vld [vmem:[#allocation2 + $0x728] sm:$0xff]  ;;  %v274_v22 = vld [vmem:[#allocation2 + $0x6e0] sm:$0xff] }
  0x3f   :  { %442 = vmatpush.msrb.mxu1 %v240_v36  ;;  %482 = vmatpush.msrb.mxu3 %v241_v38  ;;  %v139_v23 = vld [vmem:[#allocation2 + $0x2a8] sm:$0xff]  ;;  %v130_v25 = vld [vmem:[#allocation2 + $0x260] sm:$0xff] }
  0x40   :  { %423 = vmatpush.msrb.mxu0 %v104_v35  ;;  %463 = vmatpush.msrb.mxu2 %v105_v37  ;;  %v275_v24 = vld [vmem:[#allocation2 + $0x6e8] sm:$0xff]  ;;  %v266_v26 = vld [vmem:[#allocation2 + $0x6a0] sm:$0xff] }
  0x41   :  { %443 = vmatpush.msrb.mxu1 %v232_v40  ;;  %483 = vmatpush.msrb.mxu3 %v233_v42  ;;  %v131_v27 = vld [vmem:[#allocation2 + $0x268] sm:$0xff]  ;;  %v122_v29 = vld [vmem:[#allocation2 + $0x220] sm:$0xff] }
  0x42   :  { %424 = vmatpush.msrb.mxu0 %v96_v39  ;;  %464 = vmatpush.msrb.mxu2 %v97_v41  ;;  %v267_v28 = vld [vmem:[#allocation2 + $0x6a8] sm:$0xff]  ;;  %v258_v30 = vld [vmem:[#allocation2 + $0x660] sm:$0xff] }
  0x43   :  { %444 = vmatpush.msrb.mxu1 %v224_v44  ;;  %484 = vmatpush.msrb.mxu3 %v225_v46  ;;  %v123_v31 = vld [vmem:[#allocation2 + $0x228] sm:$0xff]  ;;  %v114_v33 = vld [vmem:[#allocation2 + $0x1e0] sm:$0xff] }
  0x44   :  { %425 = vmatpush.msrb.mxu0 %v88_v43  ;;  %465 = vmatpush.msrb.mxu2 %v89_v45  ;;  %v259_v32 = vld [vmem:[#allocation2 + $0x668] sm:$0xff]  ;;  %v250_v34 = vld [vmem:[#allocation2 + $0x620] sm:$0xff] }
  0x45   :  { %390 = vmatmul.f32.vlgmr.msra.gmra.mxu2 %v1105_v47  ;;  %445 = vmatpush.msrb.mxu1 %v216_v49  ;;  %v115_v35 = vld [vmem:[#allocation2 + $0x1e8] sm:$0xff]  ;;  %v106_v37 = vld [vmem:[#allocation2 + $0x1a0] sm:$0xff] }
  0x46   :  { %426 = vmatpush.msrb.mxu0 %v80_v48  ;;  %466 = vmatpush.msrb.mxu2 %v81_v50  ;;  %v251_v36 = vld [vmem:[#allocation2 + $0x628] sm:$0xff]  ;;  %v242_v38 = vld [vmem:[#allocation2 + $0x5e0] sm:$0xff] }
  0x47   :  { %485 = vmatpush.msrb.mxu3 %v217_v51  ;;  %350 = vmatmul.f32.vlgmr.msra.gmra.mxu0 %v1105_v47  ;;  %v107_v39 = vld [vmem:[#allocation2 + $0x1a8] sm:$0xff]  ;;  %v98_v41 = vld [vmem:[#allocation2 + $0x160] sm:$0xff] }
  0x48   :  { %410 = vmatmul.f32.vlgmr.msra.gmra.mxu3 %v1108_v52  ;;  %427 = vmatpush.msrb.mxu0 %v72_v53  ;;  %v243_v40 = vld [vmem:[#allocation2 + $0x5e8] sm:$0xff]  ;;  %v234_v42 = vld [vmem:[#allocation2 + $0x5a0] sm:$0xff] }
  0x49   :  { %446 = vmatpush.msrb.mxu1 %v208_v54  ;;  %467 = vmatpush.msrb.mxu2 %v73_v55  ;;  %v99_v43 = vld [vmem:[#allocation2 + $0x168] sm:$0xff]  ;;  %v90_v45 = vld [vmem:[#allocation2 + $0x120] sm:$0xff] }
  0x4a   :  { %486 = vmatpush.msrb.mxu3 %v209_v56  ;;  %370 = vmatmul.f32.vlgmr.msra.gmra.mxu1 %v1108_v52  ;;  %v235_v44 = vld [vmem:[#allocation2 + $0x5a8] sm:$0xff]  ;;  %v226_v46 = vld [vmem:[#allocation2 + $0x560] sm:$0xff] }
  0x4b   :  { %428 = vmatpush.msrb.mxu0 %v64_v57  ;;  %447 = vmatpush.msrb.mxu1 %v200_v58  ;;  %v91_v48 = vld [vmem:[#allocation2 + $0x128] sm:$0xff]  ;;  %v82_v50 = vld [vmem:[#allocation2 + $0xe0] sm:$0xff] }
  0x4c   :  { %468 = vmatpush.msrb.mxu2 %v65_v59  ;;  %487 = vmatpush.msrb.mxu3 %v201_v60  ;;  %v227_v49 = vld [vmem:[#allocation2 + $0x568] sm:$0xff]  ;;  %v218_v51 = vld [vmem:[#allocation2 + $0x520] sm:$0xff] }
  0x4d   :  { %429 = vmatpush.msrb.mxu0 %v56_v61  ;;  %448 = vmatpush.msrb.mxu1 %v192_v62  ;;  %v83_v53 = vld [vmem:[#allocation2 + $0xe8] sm:$0xff]  ;;  %v74_v55 = vld [vmem:[#allocation2 + $0xa0] sm:$0xff] }
  0x4e   :  { %469 = vmatpush.msrb.mxu2 %v57_v63  ;;  %488 = vmatpush.msrb.mxu3 %v193_v0  ;;  %v219_v54 = vld [vmem:[#allocation2 + $0x528] sm:$0xff]  ;;  %v210_v56 = vld [vmem:[#allocation2 + $0x4e0] sm:$0xff] }
  0x4f   :  { %470 = vmatmul.f32.vlgmr.msrb.gmra.mxu2 %v1105_v47  ;;  %494 = vmatpush.msra.mxu0 %v178_v1  ;;  %v75_v57 = vld [vmem:[#allocation2 + $0xa8] sm:$0xff]  ;;  %v66_v59 = vld [vmem:[#allocation2 + $0x60] sm:$0xff] }
  0x50   :  { %534 = vmatpush.msra.mxu2 %v179_v2  ;;  %449 = vmatpush.msrb.mxu1 %v184_v3  ;;  %v211_v58 = vld [vmem:[#allocation2 + $0x4e8] sm:$0xff]  ;;  %v202_v60 = vld [vmem:[#allocation2 + $0x4a0] sm:$0xff]  ;;  %v180_v3 = vld [vmem:[#allocation2 + $0x3f0] sm:$0xff] }
  0x51   :  { %489 = vmatpush.msrb.mxu3 %v185_v4  ;;  %430 = vmatmul.f32.vlgmr.msrb.gmra.mxu0 %v1105_v47  ;;  %v67_v61 = vld [vmem:[#allocation2 + $0x68] sm:$0xff]  ;;  %v58_v63 = vld [vmem:[#allocation2 + $0x20] sm:$0xff]  ;;  %v181_v4 = vld [vmem:[#allocation2 + $0x3f8] sm:$0xff] }
  0x52   :  { %490 = vmatmul.f32.vlgmr.msrb.gmra.mxu3 %v1108_v52  ;;  %495 = vmatpush.msra.mxu0 %v170_v5  ;;  %v203_v62 = vld [vmem:[#allocation2 + $0x4a8] sm:$0xff]  ;;  %v194_v0 = vld [vmem:[#allocation2 + $0x460] sm:$0xff] }
  0x53   :  { %514 = vmatpush.msra.mxu1 %v306_v6  ;;  %535 = vmatpush.msra.mxu2 %v171_v7  ;;  %v59_v1 = vld [vmem:[#allocation2 + $0x28] sm:$0xff]  ;;  %v186_v5 = vld [vmem:[#allocation2 + $0x420] sm:$0xff]  ;;  %v172_v7 = vld [vmem:[#allocation2 + $0x3b0] sm:$0xff] }
  0x54   :  { %554 = vmatpush.msra.mxu3 %v307_v8  ;;  %450 = vmatmul.f32.vlgmr.msrb.gmra.mxu1 %v1108_v52  ;;  %v195_v2 = vld [vmem:[#allocation2 + $0x468] sm:$0xff]  ;;  %v308_v8 = vld [vmem:[#allocation2 + $0x7f0] sm:$0xff] }
  0x55   :  { %496 = vmatpush.msra.mxu0 %v162_v9  ;;  %515 = vmatpush.msra.mxu1 %v298_v10  ;;  %v187_v6 = vld [vmem:[#allocation2 + $0x428] sm:$0xff]  ;;  %v173_v9 = vld [vmem:[#allocation2 + $0x3b8] sm:$0xff] }
  0x56   :  { %536 = vmatpush.msra.mxu2 %v163_v11  ;;  %555 = vmatpush.msra.mxu3 %v299_v12  ;;  %v309_v10 = vld [vmem:[#allocation2 + $0x7f8] sm:$0xff]  ;;  %v164_v11 = vld [vmem:[#allocation2 + $0x370] sm:$0xff] }
  0x57   :  { %497 = vmatpush.msra.mxu0 %v154_v13  ;;  %516 = vmatpush.msra.mxu1 %v290_v14  ;;  %v300_v12 = vld [vmem:[#allocation2 + $0x7b0] sm:$0xff]  ;;  %v165_v13 = vld [vmem:[#allocation2 + $0x378] sm:$0xff] }
  0x58   :  { %537 = vmatpush.msra.mxu2 %v155_v15  ;;  %556 = vmatpush.msra.mxu3 %v291_v16  ;;  %v301_v14 = vld [vmem:[#allocation2 + $0x7b8] sm:$0xff]  ;;  %v156_v15 = vld [vmem:[#allocation2 + $0x330] sm:$0xff] }
  0x59   :  { %498 = vmatpush.msra.mxu0 %v146_v17  ;;  %517 = vmatpush.msra.mxu1 %v282_v18  ;;  %v292_v16 = vld [vmem:[#allocation2 + $0x770] sm:$0xff]  ;;  %v157_v17 = vld [vmem:[#allocation2 + $0x338] sm:$0xff] }
  0x5a   :  { %538 = vmatpush.msra.mxu2 %v147_v19  ;;  %557 = vmatpush.msra.mxu3 %v283_v20  ;;  %v293_v18 = vld [vmem:[#allocation2 + $0x778] sm:$0xff]  ;;  %v148_v19 = vld [vmem:[#allocation2 + $0x2f0] sm:$0xff] }
  0x5b   :  { %499 = vmatpush.msra.mxu0 %v138_v21  ;;  %518 = vmatpush.msra.mxu1 %v274_v22  ;;  %v284_v20 = vld [vmem:[#allocation2 + $0x730] sm:$0xff]  ;;  %v149_v21 = vld [vmem:[#allocation2 + $0x2f8] sm:$0xff] }
  0x5c   :  { %539 = vmatpush.msra.mxu2 %v139_v23  ;;  %558 = vmatpush.msra.mxu3 %v275_v24  ;;  %v285_v22 = vld [vmem:[#allocation2 + $0x738] sm:$0xff]  ;;  %v140_v23 = vld [vmem:[#allocation2 + $0x2b0] sm:$0xff] }
  0x5d   :  { %500 = vmatpush.msra.mxu0 %v130_v25  ;;  %519 = vmatpush.msra.mxu1 %v266_v26  ;;  %v276_v24 = vld [vmem:[#allocation2 + $0x6f0] sm:$0xff]  ;;  %v141_v25 = vld [vmem:[#allocation2 + $0x2b8] sm:$0xff] }
  0x5e   :  { %540 = vmatpush.msra.mxu2 %v131_v27  ;;  %559 = vmatpush.msra.mxu3 %v267_v28  ;;  %v277_v26 = vld [vmem:[#allocation2 + $0x6f8] sm:$0xff]  ;;  %v132_v27 = vld [vmem:[#allocation2 + $0x270] sm:$0xff] }
  0x5f   :  { %501 = vmatpush.msra.mxu0 %v122_v29  ;;  %520 = vmatpush.msra.mxu1 %v258_v30  ;;  %v268_v28 = vld [vmem:[#allocation2 + $0x6b0] sm:$0xff]  ;;  %v133_v29 = vld [vmem:[#allocation2 + $0x278] sm:$0xff] }
  0x60   :  { %541 = vmatpush.msra.mxu2 %v123_v31  ;;  %560 = vmatpush.msra.mxu3 %v259_v32  ;;  %v269_v30 = vld [vmem:[#allocation2 + $0x6b8] sm:$0xff]  ;;  %v124_v31 = vld [vmem:[#allocation2 + $0x230] sm:$0xff] }
  0x61   :  { %502 = vmatpush.msra.mxu0 %v114_v33  ;;  %521 = vmatpush.msra.mxu1 %v250_v34  ;;  %v260_v32 = vld [vmem:[#allocation2 + $0x670] sm:$0xff]  ;;  %v125_v33 = vld [vmem:[#allocation2 + $0x238] sm:$0xff] }
  0x62   :  { %542 = vmatpush.msra.mxu2 %v115_v35  ;;  %561 = vmatpush.msra.mxu3 %v251_v36  ;;  %v261_v34 = vld [vmem:[#allocation2 + $0x678] sm:$0xff]  ;;  %v116_v35 = vld [vmem:[#allocation2 + $0x1f0] sm:$0xff] }
  0x63   :  { %503 = vmatpush.msra.mxu0 %v106_v37  ;;  %522 = vmatpush.msra.mxu1 %v242_v38  ;;  %v252_v36 = vld [vmem:[#allocation2 + $0x630] sm:$0xff]  ;;  %v117_v37 = vld [vmem:[#allocation2 + $0x1f8] sm:$0xff] }
  0x64   :  { %543 = vmatpush.msra.mxu2 %v107_v39  ;;  %562 = vmatpush.msra.mxu3 %v243_v40  ;;  %v253_v38 = vld [vmem:[#allocation2 + $0x638] sm:$0xff]  ;;  %v108_v39 = vld [vmem:[#allocation2 + $0x1b0] sm:$0xff] }
  0x65   :  { %504 = vmatpush.msra.mxu0 %v98_v41  ;;  %523 = vmatpush.msra.mxu1 %v234_v42  ;;  %v244_v40 = vld [vmem:[#allocation2 + $0x5f0] sm:$0xff]  ;;  %v109_v41 = vld [vmem:[#allocation2 + $0x1b8] sm:$0xff] }
  0x66   :  { %544 = vmatpush.msra.mxu2 %v99_v43  ;;  %563 = vmatpush.msra.mxu3 %v235_v44  ;;  %v245_v42 = vld [vmem:[#allocation2 + $0x5f8] sm:$0xff]  ;;  %v100_v43 = vld [vmem:[#allocation2 + $0x170] sm:$0xff] }
  0x67   :  { %505 = vmatpush.msra.mxu0 %v90_v45  ;;  %524 = vmatpush.msra.mxu1 %v226_v46  ;;  %v236_v44 = vld [vmem:[#allocation2 + $0x5b0] sm:$0xff]  ;;  %v101_v45 = vld [vmem:[#allocation2 + $0x178] sm:$0xff] }
  0x68   :  { %545 = vmatpush.msra.mxu2 %v91_v48  ;;  %564 = vmatpush.msra.mxu3 %v227_v49  ;;  %v237_v46 = vld [vmem:[#allocation2 + $0x5b8] sm:$0xff]  ;;  %v92_v48 = vld [vmem:[#allocation2 + $0x130] sm:$0xff] }
  0x69   :  { %506 = vmatpush.msra.mxu0 %v82_v50  ;;  %525 = vmatpush.msra.mxu1 %v218_v51  ;;  %v228_v49 = vld [vmem:[#allocation2 + $0x570] sm:$0xff]  ;;  %v93_v50 = vld [vmem:[#allocation2 + $0x138] sm:$0xff] }
  0x6a   :  { %546 = vmatpush.msra.mxu2 %v83_v53  ;;  %565 = vmatpush.msra.mxu3 %v219_v54  ;;  %v229_v51 = vld [vmem:[#allocation2 + $0x578] sm:$0xff]  ;;  %v84_v53 = vld [vmem:[#allocation2 + $0xf0] sm:$0xff] }
  0x6b   :  { %507 = vmatpush.msra.mxu0 %v74_v55  ;;  %526 = vmatpush.msra.mxu1 %v210_v56  ;;  %v220_v54 = vld [vmem:[#allocation2 + $0x530] sm:$0xff]  ;;  %v85_v55 = vld [vmem:[#allocation2 + $0xf8] sm:$0xff] }
  0x6c   :  { %547 = vmatpush.msra.mxu2 %v75_v57  ;;  %566 = vmatpush.msra.mxu3 %v211_v58  ;;  %v221_v56 = vld [vmem:[#allocation2 + $0x538] sm:$0xff]  ;;  %v76_v57 = vld [vmem:[#allocation2 + $0xb0] sm:$0xff] }
  0x6d   :  { %508 = vmatpush.msra.mxu0 %v66_v59  ;;  %527 = vmatpush.msra.mxu1 %v202_v60  ;;  %v212_v58 = vld [vmem:[#allocation2 + $0x4f0] sm:$0xff]  ;;  %v77_v59 = vld [vmem:[#allocation2 + $0xb8] sm:$0xff] }
  0x6e   :  { %548 = vmatpush.msra.mxu2 %v67_v61  ;;  %567 = vmatpush.msra.mxu3 %v203_v62  ;;  %v213_v60 = vld [vmem:[#allocation2 + $0x4f8] sm:$0xff]  ;;  %v68_v61 = vld [vmem:[#allocation2 + $0x70] sm:$0xff] }
  0x6f   :  { %509 = vmatpush.msra.mxu0 %v58_v63  ;;  %528 = vmatpush.msra.mxu1 %v194_v0  ;;  %v204_v62 = vld [vmem:[#allocation2 + $0x4b0] sm:$0xff]  ;;  %v69_v63 = vld [vmem:[#allocation2 + $0x78] sm:$0xff] }
  0x70   :  { %549 = vmatpush.msra.mxu2 %v59_v1  ;;  %568 = vmatpush.msra.mxu3 %v195_v2  ;;  %v205_v0 = vld [vmem:[#allocation2 + $0x4b8] sm:$0xff]  ;;  %v60_v1 = vld [vmem:[#allocation2 + $0x30] sm:$0xff] }
  0x71   :  { %510 = vmatmul.f32.vlgmr.msra.gmra.mxu0 %v1105_v47  ;;  %550 = vmatmul.f32.vlgmr.msra.gmra.mxu2 %v1105_v47  ;;  %v196_v2 = vld [vmem:[#allocation2 + $0x470] sm:$0xff] }
  0x72   :  { %574 = vmatpush.msrb.mxu0 %v180_v3  ;;  %614 = vmatpush.msrb.mxu2 %v181_v4  ;;  %v61_v3 = vld [vmem:[#allocation2 + $0x38] sm:$0xff] }
  0x73   :  { %529 = vmatpush.msra.mxu1 %v186_v5  ;;  %569 = vmatpush.msra.mxu3 %v187_v6  ;;  %v197_v4 = vld [vmem:[#allocation2 + $0x478] sm:$0xff]  ;;  %v188_v5 = vld [vmem:[#allocation2 + $0x430] sm:$0xff] }
  0x74   :  { %530 = vmatmul.f32.vlgmr.msra.gmra.mxu1 %v1108_v52  ;;  %570 = vmatmul.f32.vlgmr.msra.gmra.mxu3 %v1108_v52  ;;  %v189_v6 = vld [vmem:[#allocation2 + $0x438] sm:$0xff] }
  0x75   :  { %575 = vmatpush.msrb.mxu0 %v172_v7  ;;  %594 = vmatpush.msrb.mxu1 %v308_v8  ;;  %v677_v7 = vld [vmem:[#allocation5 + $0x78] sm:$0xff] }
  0x76   :  { %615 = vmatpush.msrb.mxu2 %v173_v9  ;;  %634 = vmatpush.msrb.mxu3 %v309_v10  ;;  %v709_v8 = vld [vmem:[#allocation5 + $0x178] sm:$0xff] }
  0x77   :  { %576 = vmatpush.msrb.mxu0 %v164_v11  ;;  %595 = vmatpush.msrb.mxu1 %v300_v12  ;;  %v693_v9 = vld [vmem:[#allocation5 + $0xf8] sm:$0xff]  ;;  %v676_v11 = vld [vmem:[#allocation5 + $0x70] sm:$0xff] }
  0x78   :  { %616 = vmatpush.msrb.mxu2 %v165_v13  ;;  %635 = vmatpush.msrb.mxu3 %v301_v14  ;;  %v725_v10 = vld [vmem:[#allocation5 + $0x1f8] sm:$0xff]  ;;  %v708_v12 = vld [vmem:[#allocation5 + $0x170] sm:$0xff] }
  0x79   :  { %577 = vmatpush.msrb.mxu0 %v156_v15  ;;  %596 = vmatpush.msrb.mxu1 %v292_v16  ;;  %v692_v13 = vld [vmem:[#allocation5 + $0xf0] sm:$0xff]  ;;  %v675_v15 = vld [vmem:[#allocation5 + $0x68] sm:$0xff] }
  0x7a   :  { %617 = vmatpush.msrb.mxu2 %v157_v17  ;;  %636 = vmatpush.msrb.mxu3 %v293_v18  ;;  %v724_v14 = vld [vmem:[#allocation5 + $0x1f0] sm:$0xff]  ;;  %v707_v16 = vld [vmem:[#allocation5 + $0x168] sm:$0xff]  ;;  %v674_v18 = vld [vmem:[#allocation5 + $0x60] sm:$0xff] }
  0x7b   :  { %578 = vmatpush.msrb.mxu0 %v148_v19  ;;  %597 = vmatpush.msrb.mxu1 %v284_v20  ;;  %v723_v17 = vld [vmem:[#allocation5 + $0x1e8] sm:$0xff]  ;;  %v706_v19 = vld [vmem:[#allocation5 + $0x160] sm:$0xff] }
  0x7c   :  { %618 = vmatpush.msrb.mxu2 %v149_v21  ;;  %637 = vmatpush.msrb.mxu3 %v285_v22  ;;  %v722_v20 = vld [vmem:[#allocation5 + $0x1e0] sm:$0xff]  ;;  %v673_v21 = vld [vmem:[#allocation5 + $0x58] sm:$0xff] }
  0x7d   :  { %579 = vmatpush.msrb.mxu0 %v140_v23  ;;  %598 = vmatpush.msrb.mxu1 %v276_v24  ;;  %v705_v22 = vld [vmem:[#allocation5 + $0x158] sm:$0xff] }
  0x7e   :  { %619 = vmatpush.msrb.mxu2 %v141_v25  ;;  %638 = vmatpush.msrb.mxu3 %v277_v26  ;;  %v689_v23 = vld [vmem:[#allocation5 + $0xd8] sm:$0xff]  ;;  %v672_v25 = vld [vmem:[#allocation5 + $0x50] sm:$0xff] }
  0x7f   :  { %580 = vmatpush.msrb.mxu0 %v132_v27  ;;  %599 = vmatpush.msrb.mxu1 %v268_v28  ;;  %v721_v24 = vld [vmem:[#allocation5 + $0x1d8] sm:$0xff]  ;;  %v704_v26 = vld [vmem:[#allocation5 + $0x150] sm:$0xff] }
  0x80   :  { %620 = vmatpush.msrb.mxu2 %v133_v29  ;;  %639 = vmatpush.msrb.mxu3 %v269_v30  ;;  %v688_v27 = vld [vmem:[#allocation5 + $0xd0] sm:$0xff]  ;;  %v671_v29 = vld [vmem:[#allocation5 + $0x48] sm:$0xff] }
  0x81   :  { %581 = vmatpush.msrb.mxu0 %v124_v31  ;;  %600 = vmatpush.msrb.mxu1 %v260_v32  ;;  %v720_v28 = vld [vmem:[#allocation5 + $0x1d0] sm:$0xff]  ;;  %v703_v30 = vld [vmem:[#allocation5 + $0x148] sm:$0xff]  ;;  %v670_v31 = vld [vmem:[#allocation5 + $0x40] sm:$0xff] }
  0x82   :  { %621 = vmatpush.msrb.mxu2 %v125_v33  ;;  %640 = vmatpush.msrb.mxu3 %v261_v34  ;;  %v702_v32 = vld [vmem:[#allocation5 + $0x140] sm:$0xff]  ;;  %v669_v33 = vld [vmem:[#allocation5 + $0x38] sm:$0xff]  ;;  %v668_v34 = vld [vmem:[#allocation5 + $0x30] sm:$0xff] }
  0x83   :  { %582 = vmatpush.msrb.mxu0 %v116_v35  ;;  %601 = vmatpush.msrb.mxu1 %v252_v36  ;;  %v687_v35 = vld [vmem:[#allocation5 + $0xc8] sm:$0xff]  ;;  %v701_v36 = vld [vmem:[#allocation5 + $0x138] sm:$0xff] }
  0x84   :  { %622 = vmatpush.msrb.mxu2 %v117_v37  ;;  %641 = vmatpush.msrb.mxu3 %v253_v38  ;;  %v719_v37 = vld [vmem:[#allocation5 + $0x1c8] sm:$0xff] }
  0x85   :  { %583 = vmatpush.msrb.mxu0 %v108_v39  ;;  %602 = vmatpush.msrb.mxu1 %v244_v40  ;;  %v667_v38 = vld [vmem:[#allocation5 + $0x28] sm:$0xff]  ;;  %v686_v39 = vld [vmem:[#allocation5 + $0xc0] sm:$0xff]  ;;  %v700_v40 = vld [vmem:[#allocation5 + $0x130] sm:$0xff] }
  0x86   :  { %623 = vmatpush.msrb.mxu2 %v109_v41  ;;  %642 = vmatpush.msrb.mxu3 %v245_v42  ;;  %v718_v41 = vld [vmem:[#allocation5 + $0x1c0] sm:$0xff] }
  0x87   :  { %584 = vmatpush.msrb.mxu0 %v100_v43  ;;  %603 = vmatpush.msrb.mxu1 %v236_v44  ;;  %v666_v42 = vld [vmem:[#allocation5 + $0x20] sm:$0xff]  ;;  %v685_v43 = vld [vmem:[#allocation5 + $0xb8] sm:$0xff]  ;;  %v699_v44 = vld [vmem:[#allocation5 + $0x128] sm:$0xff] }
  0x88   :  { %624 = vmatpush.msrb.mxu2 %v101_v45  ;;  %643 = vmatpush.msrb.mxu3 %v237_v46  ;;  %v717_v45 = vld [vmem:[#allocation5 + $0x1b8] sm:$0xff] }
  0x89   :  { %585 = vmatpush.msrb.mxu0 %v92_v48  ;;  %604 = vmatpush.msrb.mxu1 %v228_v49  ;;  %v665_v46 = vld [vmem:[#allocation5 + $0x18] sm:$0xff]  ;;  %v684_v48 = vld [vmem:[#allocation5 + $0xb0] sm:$0xff]  ;;  %v698_v49 = vld [vmem:[#allocation5 + $0x120] sm:$0xff] }
  0x8a   :  { %625 = vmatpush.msrb.mxu2 %v93_v50  ;;  %644 = vmatpush.msrb.mxu3 %v229_v51  ;;  %v716_v50 = vld [vmem:[#allocation5 + $0x1b0] sm:$0xff] }
  0x8b   :  { %586 = vmatpush.msrb.mxu0 %v84_v53  ;;  %605 = vmatpush.msrb.mxu1 %v220_v54  ;;  %v664_v51 = vld [vmem:[#allocation5 + $0x10] sm:$0xff]  ;;  %v683_v53 = vld [vmem:[#allocation5 + $0xa8] sm:$0xff]  ;;  %v697_v54 = vld [vmem:[#allocation5 + $0x118] sm:$0xff] }
  0x8c   :  { %626 = vmatpush.msrb.mxu2 %v85_v55  ;;  %645 = vmatpush.msrb.mxu3 %v221_v56  ;;  %v715_v55 = vld [vmem:[#allocation5 + $0x1a8] sm:$0xff] }
  0x8d   :  { %587 = vmatpush.msrb.mxu0 %v76_v57  ;;  %606 = vmatpush.msrb.mxu1 %v212_v58  ;;  %v663_v56 = vld [vmem:[#allocation5 + $0x8] sm:$0xff]  ;;  %v682_v57 = vld [vmem:[#allocation5 + $0xa0] sm:$0xff]  ;;  %v696_v58 = vld [vmem:[#allocation5 + $0x110] sm:$0xff] }
  0x8e   :  { %627 = vmatpush.msrb.mxu2 %v77_v59  ;;  %646 = vmatpush.msrb.mxu3 %v213_v60  ;;  %v714_v59 = vld [vmem:[#allocation5 + $0x1a0] sm:$0xff] }
  0x8f   :  { %588 = vmatpush.msrb.mxu0 %v68_v61  ;;  %607 = vmatpush.msrb.mxu1 %v204_v62  ;;  %v662_v60 = vld [vmem:[#allocation5] sm:$0xff]  ;;  %v681_v61 = vld [vmem:[#allocation5 + $0x98] sm:$0xff]  ;;  %v695_v62 = vld [vmem:[#allocation5 + $0x108] sm:$0xff] }
  0x90   :  { %628 = vmatpush.msrb.mxu2 %v69_v63  ;;  %647 = vmatpush.msrb.mxu3 %v205_v0  ;;  %v713_v63 = vld [vmem:[#allocation5 + $0x198] sm:$0xff] }
  0x91   :  { %589 = vmatpush.msrb.mxu0 %v60_v1  ;;  %608 = vmatpush.msrb.mxu1 %v196_v2  ;;  %v741_v0 = vld [vmem:[#allocation5 + $0x278] sm:$0xff]  ;;  %v680_v1 = vld [vmem:[#allocation5 + $0x90] sm:$0xff]  ;;  %v694_v2 = vld [vmem:[#allocation5 + $0x100] sm:$0xff] }
  0x92   :  { %629 = vmatpush.msrb.mxu2 %v61_v3  ;;  %648 = vmatpush.msrb.mxu3 %v197_v4  ;;  %v712_v3 = vld [vmem:[#allocation5 + $0x190] sm:$0xff] }
  0x93   :  { %590 = vmatmul.f32.vlgmr.msrb.gmra.mxu0 %v1105_v47  ;;  %630 = vmatmul.f32.vlgmr.msrb.gmra.mxu2 %v1105_v47  ;;  %v691_v47 = vld [vmem:[#allocation5 + $0xe8] sm:$0xff]  ;;  %v740_v4 = vld [vmem:[#allocation5 + $0x270] sm:$0xff] }
  0x94   :  { %609 = vmatpush.msrb.mxu1 %v188_v5  ;;  %649 = vmatpush.msrb.mxu3 %v189_v6  ;;  %v679_v5 = vld [vmem:[#allocation5 + $0x88] sm:$0xff] }
  0x95   :  { %610 = vmatmul.f32.vlgmr.msrb.gmra.mxu1 %v1108_v52  ;;  %650 = vmatmul.f32.vlgmr.msrb.gmra.mxu3 %v1108_v52  ;;  %v690_v52 = vld [vmem:[#allocation5 + $0xe0] sm:$0xff]  ;;  %v711_v6 = vld [vmem:[#allocation5 + $0x188] sm:$0xff] }
  0x96   :  { %794 = vmatpush.msra.mxu0 %v677_v7  ;;  %834 = vmatpush.msra.mxu2 %v709_v8  ;;  %v739_v7 = vld [vmem:[#allocation5 + $0x268] sm:$0xff]  ;;  %v678_v8 = vld [vmem:[#allocation5 + $0x80] sm:$0xff] }
  0x97   :  { %814 = vmatpush.msra.mxu1 %v693_v9  ;;  %854 = vmatpush.msra.mxu3 %v725_v10  ;;  %v710_v9 = vld [vmem:[#allocation5 + $0x180] sm:$0xff]  ;;  %v757_v10 = vld [vmem:[#allocation5 + $0x2f8] sm:$0xff] }
  0x98   :  { %795 = vmatpush.msra.mxu0 %v676_v11  ;;  %835 = vmatpush.msra.mxu2 %v708_v12  ;;  %v738_v11 = vld [vmem:[#allocation5 + $0x260] sm:$0xff]  ;;  %v756_v12 = vld [vmem:[#allocation5 + $0x2f0] sm:$0xff] }
  0x99   :  { %815 = vmatpush.msra.mxu1 %v692_v13  ;;  %855 = vmatpush.msra.mxu3 %v724_v14  ;;  %v737_v13 = vld [vmem:[#allocation5 + $0x258] sm:$0xff]  ;;  %v755_v14 = vld [vmem:[#allocation5 + $0x2e8] sm:$0xff] }
  0x9a   :  { %796 = vmatpush.msra.mxu0 %v675_v15  ;;  %836 = vmatpush.msra.mxu2 %v707_v16  ;;  %v1128_v15 = vld [vmem:[%s1146_s2] sm:$0xff]  ;;  %v736_v16 = vld [vmem:[#allocation5 + $0x250] sm:$0xff] }
  0x9b   :  { %816 = vmatpush.msra.mxu1 %v691_v47  ;;  %856 = vmatpush.msra.mxu3 %v723_v17  ;;  %v312_v47 = vperm.slane %v1128_v15, 0  ;;  %v754_v17 = vld [vmem:[#allocation5 + $0x2e0] sm:$0xff] }
  0x9c   :  { %797 = vmatpush.msra.mxu0 %v674_v18  ;;  %837 = vmatpush.msra.mxu2 %v706_v19  ;;  %v735_v18 = vld [vmem:[#allocation5 + $0x248] sm:$0xff]  ;;  %v753_v19 = vld [vmem:[#allocation5 + $0x2d8] sm:$0xff] }
  0x9d   :  { %817 = vmatpush.msra.mxu1 %v690_v52  ;;  %857 = vmatpush.msra.mxu3 %v722_v20  ;;  %v734_v20 = vld [vmem:[#allocation5 + $0x240] sm:$0xff] }
  0x9e   :  { %798 = vmatpush.msra.mxu0 %v673_v21  ;;  %838 = vmatpush.msra.mxu2 %v705_v22  ;;  %v313_v22 = vperm.slane %v1128_v15, 1 }
  0x9f   :  { %818 = vmatpush.msra.mxu1 %v689_v23  ;;  %858 = vmatpush.msra.mxu3 %v721_v24  ;;  %v752_v23 = vld [vmem:[#allocation5 + $0x2d0] sm:$0xff]  ;;  %v733_v24 = vld [vmem:[#allocation5 + $0x238] sm:$0xff] }
  0xa0   :  { %799 = vmatpush.msra.mxu0 %v672_v25  ;;  %839 = vmatpush.msra.mxu2 %v704_v26  ;;  %v751_v26 = vld [vmem:[#allocation5 + $0x2c8] sm:$0xff] }
  0xa1   :  { %819 = vmatpush.msra.mxu1 %v688_v27  ;;  %859 = vmatpush.msra.mxu3 %v720_v28 }
  0xa2   :  { %800 = vmatpush.msra.mxu0 %v671_v29  ;;  %840 = vmatpush.msra.mxu2 %v703_v30  ;;  %v732_v29 = vld [vmem:[#allocation5 + $0x230] sm:$0xff] }
  0xa3   :  { %820 = vmatpush.msra.mxu1 %v687_v35  ;;  %860 = vmatpush.msra.mxu3 %v719_v37  ;;  %v314_v35 = vperm.slane %v1128_v15, 2 }
  0xa4   :  { %801 = vmatpush.msra.mxu0 %v670_v31  ;;  %841 = vmatpush.msra.mxu2 %v702_v32  ;;  %v750_v31 = vld [vmem:[#allocation5 + $0x2c0] sm:$0xff] }
  0xa5   :  { %821 = vmatpush.msra.mxu1 %v686_v39  ;;  %861 = vmatpush.msra.mxu3 %v718_v41 }
  0xa6   :  { %802 = vmatpush.msra.mxu0 %v669_v33  ;;  %842 = vmatpush.msra.mxu2 %v701_v36  ;;  %v731_v33 = vld [vmem:[#allocation5 + $0x228] sm:$0xff]  ;;  %v749_v36 = vld [vmem:[#allocation5 + $0x2b8] sm:$0xff] }
  0xa7   :  { %822 = vmatpush.msra.mxu1 %v685_v43  ;;  %862 = vmatpush.msra.mxu3 %v717_v45  ;;  %v729_v43 = vld [vmem:[#allocation5 + $0x218] sm:$0xff] }
  0xa8   :  { %803 = vmatpush.msra.mxu0 %v668_v34  ;;  %843 = vmatpush.msra.mxu2 %v700_v40 }
  0xa9   :  { %823 = vmatpush.msra.mxu1 %v684_v48  ;;  %863 = vmatpush.msra.mxu3 %v716_v50  ;;  %v747_v50 = vld [vmem:[#allocation5 + $0x2a8] sm:$0xff] }
  0xaa   :  { %804 = vmatpush.msra.mxu0 %v667_v38  ;;  %844 = vmatpush.msra.mxu2 %v699_v44  ;;  %v730_v38 = vld [vmem:[#allocation5 + $0x220] sm:$0xff]  ;;  %v748_v44 = vld [vmem:[#allocation5 + $0x2b0] sm:$0xff] }
  0xab   :  { %824 = vmatpush.msra.mxu1 %v683_v53  ;;  %864 = vmatpush.msra.mxu3 %v715_v55  ;;  %v746_v55 = vld [vmem:[#allocation5 + $0x2a0] sm:$0xff] }
  0xac   :  { %805 = vmatpush.msra.mxu0 %v666_v42  ;;  %845 = vmatpush.msra.mxu2 %v698_v49  ;;  %v315_v42 = vperm.slane %v1128_v15, 3  ;;  %v728_v49 = vld [vmem:[#allocation5 + $0x210] sm:$0xff] }
  0xad   :  { %825 = vmatpush.msra.mxu1 %v682_v57  ;;  %865 = vmatpush.msra.mxu3 %v714_v59  ;;  %v726_v57 = vld [vmem:[#allocation5 + $0x200] sm:$0xff] }
  0xae   :  { %806 = vmatpush.msra.mxu0 %v665_v46  ;;  %846 = vmatpush.msra.mxu2 %v697_v54  ;;  %v727_v54 = vld [vmem:[#allocation5 + $0x208] sm:$0xff] }
  0xaf   :  { %826 = vmatpush.msra.mxu1 %v681_v61  ;;  %866 = vmatpush.msra.mxu3 %v713_v63  ;;  %v772_v63 = vld [vmem:[#allocation5 + $0x370] sm:$0xff] }
  0xb0   :  { %807 = vmatpush.msra.mxu0 %v664_v51  ;;  %847 = vmatpush.msra.mxu2 %v696_v58  ;;  %v745_v58 = vld [vmem:[#allocation5 + $0x298] sm:$0xff] }
  0xb1   :  { %827 = vmatpush.msra.mxu1 %v680_v1  ;;  %867 = vmatpush.msra.mxu3 %v712_v3  ;;  %v771_v1 = vld [vmem:[#allocation5 + $0x368] sm:$0xff]  ;;  %v770_v3 = vld [vmem:[#allocation5 + $0x360] sm:$0xff] }
  0xb2   :  { %808 = vmatpush.msra.mxu0 %v663_v56  ;;  %848 = vmatpush.msra.mxu2 %v695_v62  ;;  %v744_v62 = vld [vmem:[#allocation5 + $0x290] sm:$0xff] }
  0xb3   :  { %828 = vmatpush.msra.mxu1 %v679_v5  ;;  %868 = vmatpush.msra.mxu3 %v711_v6  ;;  %v769_v5 = vld [vmem:[#allocation5 + $0x358] sm:$0xff]  ;;  %v788_v6 = vld [vmem:[#allocation5 + $0x3f0] sm:$0xff] }
  0xb4   :  { %809 = vmatpush.msra.mxu0 %v662_v60  ;;  %849 = vmatpush.msra.mxu2 %v694_v2  ;;  %v773_v60 = vld [vmem:[#allocation5 + $0x378] sm:$0xff]  ;;  %v742_v2 = vld [vmem:[#allocation5 + $0x280] sm:$0xff] }
  0xb5   :  { %829 = vmatpush.msra.mxu1 %v678_v8  ;;  %869 = vmatpush.msra.mxu3 %v710_v9  ;;  %v768_v8 = vld [vmem:[#allocation5 + $0x350] sm:$0xff]  ;;  %v786_v9 = vld [vmem:[#allocation5 + $0x3e0] sm:$0xff] }
  0xb6   :  { %874 = vmatpush.msrb.mxu0 %v741_v0  ;;  %914 = vmatpush.msrb.mxu2 %v773_v60  ;;  %v743_v0 = vld [vmem:[#allocation5 + $0x288] sm:$0xff] }
  0xb7   :  { %894 = vmatpush.msrb.mxu1 %v757_v10  ;;  %v767_v10 = vld [vmem:[#allocation5 + $0x348] sm:$0xff] }
  0xb8   :  { %875 = vmatpush.msrb.mxu0 %v740_v4  ;;  %915 = vmatpush.msrb.mxu2 %v772_v63  ;;  %v789_v4 = vld [vmem:[#allocation5 + $0x3f8] sm:$0xff] }
  0xb9   :  { %895 = vmatpush.msrb.mxu1 %v756_v12  ;;  %934 = vmatpush.msrb.mxu3 %v789_v4  ;;  %v766_v12 = vld [vmem:[#allocation5 + $0x340] sm:$0xff] }
  0xba   :  { %876 = vmatpush.msrb.mxu0 %v739_v7  ;;  %916 = vmatpush.msrb.mxu2 %v771_v1  ;;  %v787_v7 = vld [vmem:[#allocation5 + $0x3e8] sm:$0xff] }
  0xbb   :  { %896 = vmatpush.msrb.mxu1 %v755_v14  ;;  %935 = vmatpush.msrb.mxu3 %v788_v6  ;;  %v765_v14 = vld [vmem:[#allocation5 + $0x338] sm:$0xff] }
  0xbc   :  { %877 = vmatpush.msrb.mxu0 %v738_v11  ;;  %917 = vmatpush.msrb.mxu2 %v770_v3  ;;  %v785_v11 = vld [vmem:[#allocation5 + $0x3d8] sm:$0xff] }
  0xbd   :  { %897 = vmatpush.msrb.mxu1 %v754_v17  ;;  %936 = vmatpush.msrb.mxu3 %v787_v7  ;;  %v782_v17 = vld [vmem:[#allocation5 + $0x3c0] sm:$0xff] }
  0xbe   :  { %878 = vmatpush.msrb.mxu0 %v737_v13  ;;  %918 = vmatpush.msrb.mxu2 %v769_v5  ;;  %v784_v13 = vld [vmem:[#allocation5 + $0x3d0] sm:$0xff] }
  0xbf   :  { %898 = vmatpush.msrb.mxu1 %v753_v19  ;;  %937 = vmatpush.msrb.mxu3 %v786_v9  ;;  %v781_v19 = vld [vmem:[#allocation5 + $0x3b8] sm:$0xff] }
  0xc0   :  { %879 = vmatpush.msrb.mxu0 %v736_v16  ;;  %919 = vmatpush.msrb.mxu2 %v768_v8  ;;  %v783_v16 = vld [vmem:[#allocation5 + $0x3c8] sm:$0xff] }
  0xc1   :  { %899 = vmatpush.msrb.mxu1 %v752_v23  ;;  %938 = vmatpush.msrb.mxu3 %v785_v11  ;;  %v761_v23 = vld [vmem:[#allocation5 + $0x318] sm:$0xff] }
  0xc2   :  { %880 = vmatpush.msrb.mxu0 %v735_v18  ;;  %920 = vmatpush.msrb.mxu2 %v767_v10  ;;  %v763_v18 = vld [vmem:[#allocation5 + $0x328] sm:$0xff] }
  0xc3   :  { %900 = vmatpush.msrb.mxu1 %v751_v26  ;;  %939 = vmatpush.msrb.mxu3 %v784_v13  ;;  %v317_v26 = vperm.slane %v1128_v15, 5 }
  0xc4   :  { %v351_v52 = vpop.f32.mrf.mxu0  ;;  %881 = vmatpush.msrb.mxu0 %v734_v20  ;;  %921 = vmatpush.msrb.mxu2 %v766_v12  ;;  %v762_v20 = vld [vmem:[#allocation5 + $0x320] sm:$0xff] }
  0xc5   :  { %v352_v21 = vadd.f32 %v351_v52, %v312_v47  ;;  %901 = vmatpush.msrb.mxu1 %v750_v31  ;;  %v764_v47 = vld [vmem:[#allocation5 + $0x330] sm:$0xff]  ;;  %940 = vmatpush.msrb.mxu3 %v783_v16  ;;  %v316_v52 = vperm.slane %v1128_v15, 4  ;;  %v778_v31 = vld [vmem:[#allocation5 + $0x3a0] sm:$0xff] }
  0xc6   :  { %882 = vmatpush.msrb.mxu0 %v733_v24  ;;  %922 = vmatpush.msrb.mxu2 %v765_v14  ;;  %v780_v24 = vld [vmem:[#allocation5 + $0x3b0] sm:$0xff] }
  0xc7   :  { %v371_v25 = vpop.f32.mrf.mxu1  ;;  %902 = vmatpush.msrb.mxu1 %v749_v36  ;;  %941 = vmatpush.msrb.mxu3 %v782_v17  ;;  %v777_v36 = vld [vmem:[#allocation5 + $0x398] sm:$0xff] }
  0xc8   :  { %v372_v27 = vadd.f32 %v371_v25, %v352_v21  ;;  %v391_v28 = vpop.f32.mrf.mxu2  ;;  %883 = vmatpush.msrb.mxu0 %v732_v29  ;;  %923 = vmatpush.msrb.mxu2 %v764_v47 }
  0xc9   :  { %v392_v30 = vadd.f32 %v391_v28, %v313_v22  ;;  %903 = vmatpush.msrb.mxu1 %v748_v44  ;;  %942 = vmatpush.msrb.mxu3 %v781_v19  ;;  %v779_v28 = vld [vmem:[#allocation5 + $0x3a8] sm:$0xff] }
  0xca   :  { %v654_v32 = vmax.f32 %v372_v27, 0.0  ;;  %884 = vmatpush.msrb.mxu0 %v731_v33  ;;  %924 = vmatpush.msrb.mxu2 %v763_v18  ;;  %v760_v27 = vld [vmem:[#allocation5 + $0x310] sm:$0xff] }
  0xcb   :  { %v411_v34 = vpop.f32.mrf.mxu3  ;;  %904 = vmatpush.msrb.mxu1 %v747_v50  ;;  %943 = vmatpush.msrb.mxu3 %v780_v24 }
  0xcc   :  { %v412_v37 = vadd.f32 %v411_v34, %v392_v30  ;;  %810 = vmatmul.f32.vlgmr.msra.gmra.mxu0 %v654_v32  ;;  %925 = vmatpush.msrb.mxu2 %v762_v20  ;;  %v759_v30 = vld [vmem:[#allocation5 + $0x308] sm:$0xff] }
  0xcd   :  { %885 = vmatpush.msrb.mxu0 %v730_v38  ;;  %905 = vmatpush.msrb.mxu1 %v746_v55  ;;  %v776_v38 = vld [vmem:[#allocation5 + $0x390] sm:$0xff] }
  0xce   :  { %v655_v39 = vmax.f32 %v412_v37, 0.0  ;;  %v431_v40 = vpop.f32.mrf.mxu0  ;;  %926 = vmatpush.msrb.mxu2 %v761_v23  ;;  %944 = vmatpush.msrb.mxu3 %v779_v28 }
  0xcf   :  { %v432_v41 = vadd.f32 %v431_v40, %v314_v35  ;;  %886 = vmatpush.msrb.mxu0 %v729_v43  ;;  %906 = vmatpush.msrb.mxu1 %v745_v58  ;;  %v758_v35 = vld [vmem:[#allocation5 + $0x300] sm:$0xff]  ;;  %v775_v40 = vld [vmem:[#allocation5 + $0x388] sm:$0xff]  ;;  %v318_v43 = vperm.slane %v1128_v15, 6 }
  0xd0   :  { %830 = vmatmul.f32.vlgmr.msra.gmra.mxu1 %v655_v39  ;;  %927 = vmatpush.msrb.mxu2 %v760_v27 }
  0xd1   :  { %v451_v45 = vpop.f32.mrf.mxu1  ;;  %887 = vmatpush.msrb.mxu0 %v728_v49  ;;  %907 = vmatpush.msrb.mxu1 %v744_v62  ;;  %v319_v49 = vperm.slane %v1128_v15, 7 }
  0xd2   :  { %v452_v46 = vadd.f32 %v451_v45, %v432_v41  ;;  %v471_v48 = vpop.f32.mrf.mxu2  ;;  %928 = vmatpush.msrb.mxu2 %v759_v30  ;;  %945 = vmatpush.msrb.mxu3 %v778_v31 }
  0xd3   :  { %v472_v51 = vadd.f32 %v471_v48, %v315_v42  ;;  %888 = vmatpush.msrb.mxu0 %v727_v54  ;;  %908 = vmatpush.msrb.mxu1 %v743_v0  ;;  %v774_v42 = vld [vmem:[#allocation5 + $0x380] sm:$0xff] }
  0xd4   :  { %v656_v53 = vmax.f32 %v452_v46, 0.0  ;;  %929 = vmatpush.msrb.mxu2 %v758_v35  ;;  %946 = vmatpush.msrb.mxu3 %v777_v36 }
  0xd5   :  { %v491_v56 = vpop.f32.mrf.mxu3  ;;  %889 = vmatpush.msrb.mxu0 %v726_v57  ;;  %909 = vmatpush.msrb.mxu1 %v742_v2  ;;  %v980_v57 = vld [vmem:[%s1148_s4] ss:$0 sm:$0xff] }
  0xd6   :  { %v492_v59 = vadd.f32 %v491_v56, %v472_v51  ;;  %850 = vmatmul.f32.vlgmr.msra.gmra.mxu2 %v656_v53  ;;  %947 = vmatpush.msrb.mxu3 %v776_v38 }
  0xd8   :  { %v657_v61 = vmax.f32 %v492_v59, 0.0  ;;  %948 = vmatpush.msrb.mxu3 %v775_v40 }
  0xda   :  { %870 = vmatmul.f32.vlgmr.msra.gmra.mxu3 %v657_v61 }
  0xdb   :  { %949 = vmatpush.msrb.mxu3 %v774_v42 }
  0xee   :  { %v511_v21 = vpop.f32.mrf.mxu0 }
  0xef   :  { %v512_v22 = vadd.f32 %v511_v21, %v316_v52 }
  0xf1   :  { %v531_v25 = vpop.f32.mrf.mxu1 }
  0xf2   :  { %v532_v29 = vadd.f32 %v531_v25, %v512_v22 }
  0xf4   :  { %v658_v32 = vmax.f32 %v532_v29, 0.0  ;;  %v551_v33 = vpop.f32.mrf.mxu2 }
  0xf5   :  { %v552_v34 = vadd.f32 %v551_v33, %v317_v26 }
  0xf6   :  { %890 = vmatmul.f32.vlgmr.msrb.gmra.mxu0 %v658_v32 }
  0xf7   :  { %v571_v37 = vpop.f32.mrf.mxu3 }
  0xf8   :  { %v572_v39 = vadd.f32 %v571_v37, %v552_v34 }
  0xfa   :  { %v659_v41 = vmax.f32 %v572_v39, 0.0 }
  0xfc   :  { %910 = vmatmul.f32.vlgmr.msrb.gmra.mxu1 %v659_v41 }
 0x110   :  { %v591_v44 = vpop.f32.mrf.mxu0 }
 0x111   :  { %v592_v45 = vadd.f32 %v591_v44, %v318_v43 }
 0x112   :  { %v611_v46 = vpop.f32.mrf.mxu1 }
 0x113   :  { %v612_v48 = vadd.f32 %v611_v46, %v592_v45 }
 0x115   :  { %v660_v50 = vmax.f32 %v612_v48, 0.0 }
 0x116   :  { %v631_v51 = vpop.f32.mrf.mxu2 }
 0x117   :  { %v632_v53 = vadd.f32 %v631_v51, %v319_v49  ;;  %930 = vmatmul.f32.vlgmr.msrb.gmra.mxu2 %v660_v50 }
 0x118   :  { %v651_v54 = vpop.f32.mrf.mxu3 }
 0x119   :  { %v652_v55 = vadd.f32 %v651_v54, %v632_v53 }
 0x11b   :  { %v661_v56 = vmax.f32 %v652_v55, 0.0 }
 0x11d   :  { %950 = vmatmul.f32.vlgmr.msrb.gmra.mxu3 %v661_v56 }
 0x149   :  { %v811_v58 = vpop.f32.mrf.mxu0 }
 0x14a   :  { %v812_v59 = vadd.f32 %v980_v57, %v811_v58 }
 0x14d   :  { %v831_v60 = vpop.f32.mrf.mxu1 }
 0x14e   :  { %v832_v61 = vadd.f32 %v831_v60, %v812_v59 }
 0x159   :  { %v851_v62 = vpop.f32.mrf.mxu2 }
 0x15a   :  { %v852_v0 = vadd.f32 %v851_v62, %v832_v61 }
 0x15d   :  { %v871_v63 = vpop.f32.mrf.mxu3 }
 0x15e   :  { %v872_v1 = vadd.f32 %v871_v63, %v852_v0 }
 0x173   :  { %v891_v15 = vpop.f32.mrf.mxu0 }
 0x174   :  { %v892_v3 = vadd.f32 %v891_v15, %v872_v1 }
 0x179   :  { %v911_v2 = vpop.f32.mrf.mxu1 }
 0x17a   :  { %v912_v5 = vadd.f32 %v911_v2, %v892_v3 }
 0x19a   :  { %v931_v4 = vpop.f32.mrf.mxu2 }
 0x19b   :  { %v932_v6 = vadd.f32 %v931_v4, %v912_v5 }
 0x1a0   :  { %v951_v7 = vpop.f32.mrf.mxu3 }
 0x1a1   :  { %v952_v8 = vadd.f32 %v951_v7, %v932_v6 }
 0x1a3   :  { %954 = vst [vmem:[#allocation7] sm:$0x3] %v952_v8 }
 0x1a4   :  { %965 = dma.vmem_to_hbm [thread:$0]  %s961_s10, 32, %s963_s13, [#allocation4]  }
 0x1a5   :  { %1057 = dma.done.wait [#allocation4], 32  }
 0x1a6   :  { %1058 = vsyncadd [#allocation4], 4294967264 }
 0x1a7   :  { %970 = vsyncpa [#allocation3], 1 }
 0x1a8   :  { %971 = vsyncpa [#allocation6], 1 }
 0x1a9   :  { %972 = vsyncpa [#allocation4], 1 }

</bundles_post_ra>
